<compile_context>
chip_gen: v6e
topology: v6e:2x2x1
jax: 0.10.0
libtpu: 0.0.40
codegen_flags: <defaults>
</compile_context>

<pallas_src>
import functools
import math

import jax
import jax.numpy as jnp
import numpy as np
from jax.experimental import pallas as pl
from jax.experimental.pallas import tpu as pltpu

_LANE = 128
_MAX_R_TILE = 2048          # feature rows per grid step (<= 1 MB / f32 stream)


def _srloss_kernel(order_ref, start_ref, end_ref,    # scalar prefetch (SMEM)
                   p_ref, t_ref,                     # (1, r_tile, 128) blocks
                   o_ref,                            # (1, 1) f32 SMEM output
                   carry_ref, cstart_ref, acc_ref,   # VMEM scratch
                   *, inv_count):
    del order_ref                                    # only used by index_maps
    ft = pl.program_id(0)                            # feature tile (outer)
    i = pl.program_id(1)                             # schedule step (inner)

    @pl.when(jnp.logical_and(ft == 0, i == 0))
    def _():
        acc_ref[...] = jnp.zeros_like(acc_ref)

    # d = predicts - target for the batch row visited at this schedule step
    # (cast in-kernel; inputs stream in their native dtype).
    d_new = p_ref[0].astype(jnp.float32) - t_ref[0].astype(jnp.float32)

    is_start = start_ref[i] != 0                     # first node of a cycle
    is_end = end_ref[i] != 0                         # last node of a cycle

    @pl.when(jnp.logical_not(is_start))
    def _():
        # Term for the previously visited node: |d_prev - d[perm[prev]]|.
        acc_ref[...] += jnp.abs(carry_ref[...] - d_new)

    @pl.when(is_start)
    def _():
        cstart_ref[...] = d_new

    carry_ref[...] = d_new

    @pl.when(is_end)
    def _():
        # Close the cycle: |d_last - d[perm[last]]| = |d_last - d_cycle_start|.
        acc_ref[...] += jnp.abs(d_new - cstart_ref[...])

    @pl.when(jnp.logical_and(ft == pl.num_programs(0) - 1,
                             i == pl.num_programs(1) - 1))
    def _():
        # One cross-lane/sublane reduction for the whole call, then the mean.
        o_ref[0, 0] = jnp.sum(acc_ref[...]) * inv_count


def _cycle_schedule(perm):
    """Host-side cycle decomposition of the batch permutation."""
    B = perm.shape[0]
    visited = np.zeros(B, dtype=bool)
    order = np.empty(B, dtype=np.int32)
    is_start = np.zeros(B, dtype=np.int32)
    is_end = np.zeros(B, dtype=np.int32)
    pos = 0
    for s in range(B):
        if visited[s]:
            continue
        is_start[pos] = 1
        cur = s
        while not visited[cur]:
            visited[cur] = True
            order[pos] = cur
            pos += 1
            cur = int(perm[cur])
        is_end[pos - 1] = 1
    assert pos == B
    return order, is_start, is_end


def sr_loss(predicts, target, perm):
    """Pallas TPU implementation of SRLoss.forward (permutation passed in)."""
    assert predicts.shape == target.shape, "predicts/target shape mismatch"
    B = predicts.shape[0]
    F = int(math.prod(predicts.shape[1:]))
    count = B * F                                    # true element count (mean)

    # Host-side schedule (the original module shuffles on the host anyway).
    perm_np = np.asarray(jax.device_get(perm)).astype(np.int64).reshape(B)
    assert np.array_equal(np.sort(perm_np), np.arange(B)), \
        "perm must be a permutation of range(B)"
    order, is_start, is_end = _cycle_schedule(perm_np)

    # Feature tiling: r_tile rows of 128 lanes per step.  Pad the flattened
    # feature axis so r_tile divides the row count and r_tile is a multiple of
    # 8 (sublane rule).  Padding is identical for predicts and target, so the
    # padded lanes of d are 0 and contribute exactly 0 to |v1 - v2|; the mean
    # divides by the true element count.
    r_rows = int(pl.cdiv(F, _LANE))
    r_tile = int(min(_MAX_R_TILE, ((r_rows + 7) // 8) * 8))
    n_ftiles = int(pl.cdiv(r_rows, r_tile))
    Fp = n_ftiles * r_tile * _LANE
    p2 = predicts.reshape(B, F)
    t2 = target.reshape(B, F)
    if Fp != F:
        p2 = jnp.pad(p2, ((0, 0), (0, Fp - F)))
        t2 = jnp.pad(t2, ((0, 0), (0, Fp - F)))
    p3 = p2.reshape(B, n_ftiles * r_tile, _LANE)
    t3 = t2.reshape(B, n_ftiles * r_tile, _LANE)

    kernel = functools.partial(_srloss_kernel, inv_count=1.0 / count)

    blk = (1, r_tile, _LANE)
    # index_maps receive the scalar-prefetch refs as trailing positional args.
    row_map = lambda ft, i, order_ref, start_ref, end_ref: (order_ref[i], ft, 0)

    itemsize = jnp.dtype(predicts.dtype).itemsize
    out = pl.pallas_call(
        kernel,
        out_shape=jax.ShapeDtypeStruct((1, 1), jnp.float32),
        grid_spec=pltpu.PrefetchScalarGridSpec(
            num_scalar_prefetch=3,
            grid=(n_ftiles, B),
            in_specs=[
                pl.BlockSpec(blk, row_map),           # predicts[order[i]]
                pl.BlockSpec(blk, row_map),           # target[order[i]]
            ],
            out_specs=pl.BlockSpec(memory_space=pltpu.MemorySpace.SMEM),
            scratch_shapes=[
                pltpu.VMEM((r_tile, _LANE), jnp.float32),   # d carry
                pltpu.VMEM((r_tile, _LANE), jnp.float32),   # d at cycle start
                pltpu.VMEM((r_tile, _LANE), jnp.float32),   # |.| accumulator
            ],
        ),
        compiler_params=pltpu.CompilerParams(
            # Both axes carry state (cycle carry / accumulator) -> "arbitrary".
            dimension_semantics=("arbitrary", "arbitrary")),
        cost_estimate=pl.CostEstimate(
            flops=4 * B * Fp,
            transcendentals=0,
            bytes_accessed=2 * B * Fp * itemsize + 3 * B * 4 + 4),
    )(jnp.asarray(order), jnp.asarray(is_start), jnp.asarray(is_end), p3, t3)

    return out[0, 0]


def _reference(predicts, target, perm):
    """Plain-JAX mirror of the PyTorch forward (same permutation)."""
    v1 = predicts - predicts[perm]
    v2 = target - target[perm]
    return jnp.mean(jnp.abs(v1 - v2))


if __name__ == "__main__":
    B, C, H, W = 8, 4, 16, 16

    key = jax.random.PRNGKey(0)
    kp, kt, ks = jax.random.split(key, 3)
    predicts = jax.random.normal(kp, (B, C, H, W), dtype=jnp.float32)
    target = jax.random.normal(kt, (B, C, H, W), dtype=jnp.float32)
    # The module's random.shuffle is replaced by an explicit permutation input.
    perm = jax.random.permutation(ks, B).astype(jnp.int32)

    loss = sr_loss(predicts, target, perm)
    loss = jax.block_until_ready(loss)

    ref = _reference(predicts, target, perm)
    assert loss.shape == ()
    assert jnp.allclose(loss, ref, atol=1e-5, rtol=1e-5), (loss, ref)

    print("KERNEL_OK")
</pallas_src>

<mosaic_0001>
module attributes {stable_mosaic.version = 11 : i64} {
  func.func @_srloss_kernel(%arg0: i32, %arg1: i32, %arg2: memref<8xi32, #tpu.memory_space<smem>>, %arg3: memref<8xi32, #tpu.memory_space<smem>>, %arg4: memref<8xi32, #tpu.memory_space<smem>>, %arg5: memref<1x8x128xf32, #tpu.memory_space<vmem>>, %arg6: memref<1x8x128xf32, #tpu.memory_space<vmem>>, %arg7: memref<1x1xf32, #tpu.memory_space<smem>>, %arg8: memref<8x128xf32, #tpu.memory_space<vmem>>, %arg9: memref<8x128xf32, #tpu.memory_space<vmem>>, %arg10: memref<8x128xf32, #tpu.memory_space<vmem>>) attributes {dimension_semantics = [#tpu.dimension_semantics<arbitrary>, #tpu.dimension_semantics<arbitrary>], iteration_bounds = array<i64: 1, 8>, scalar_prefetch = 3 : i64, scratch_operands = 3 : i64, tpu.core_type = #tpu.core_type<tc>, window_params = [{transform_indices = @transform_0, window_bounds = array<i64: 1, 8, 128>}, {transform_indices = @transform_1, window_bounds = array<i64: 1, 8, 128>}, {transform_indices = @transform_2, window_bounds = array<i64: 1, 1>}]} {
    %c0_i32 = arith.constant 0 : i32
    %0 = arith.cmpi eq, %arg0, %c0_i32 : i32
    %c0_i32_0 = arith.constant 0 : i32
    %1 = arith.cmpi eq, %arg1, %c0_i32_0 : i32
    %2 = arith.andi %0, %1 : i1
    %3 = arith.extui %2 : i1 to i32
    %c0_i32_1 = arith.constant 0 : i32
    %4 = arith.cmpi ne, %3, %c0_i32_1 : i32
    scf.if %4 {
      %cst = arith.constant 0.000000e+00 : f32
      %29 = vector.broadcast %cst : f32 to vector<8x128xf32>
      %c0_16 = arith.constant 0 : index
      %c0_17 = arith.constant 0 : index
      %30 = vector.load %arg10[%c0_16, %c0_17] : memref<8x128xf32, #tpu.memory_space<vmem>>, vector<8x128xf32>
      tpu.vector_store %arg10[%c0_16, %c0_17], %29 {strides = array<i32>} : memref<8x128xf32, #tpu.memory_space<vmem>>, vector<8x128xf32>,
    } else {
    }
    %c0 = arith.constant 0 : index
    %c0_2 = arith.constant 0 : index
    %c0_3 = arith.constant 0 : index
    %5 = vector.load %arg5[%c0, %c0_2, %c0_3] : memref<1x8x128xf32, #tpu.memory_space<vmem>>, vector<1x8x128xf32>
    %6 = vector.shape_cast %5 : vector<1x8x128xf32> to vector<8x128xf32>
    %c0_4 = arith.constant 0 : index
    %c0_5 = arith.constant 0 : index
    %c0_6 = arith.constant 0 : index
    %7 = vector.load %arg6[%c0_4, %c0_5, %c0_6] : memref<1x8x128xf32, #tpu.memory_space<vmem>>, vector<1x8x128xf32>
    %8 = vector.shape_cast %7 : vector<1x8x128xf32> to vector<8x128xf32>
    %9 = arith.subf %6, %8 : vector<8x128xf32>
    %10 = arith.index_cast %arg1 : i32 to index
    %11 = memref.load %arg3[%10] : memref<8xi32, #tpu.memory_space<smem>>
    %c0_i32_7 = arith.constant 0 : i32
    %12 = arith.cmpi ne, %11, %c0_i32_7 : i32
    %13 = arith.index_cast %arg1 : i32 to index
    %14 = memref.load %arg4[%13] : memref<8xi32, #tpu.memory_space<smem>>
    %c0_i32_8 = arith.constant 0 : i32
    %15 = arith.cmpi ne, %14, %c0_i32_8 : i32
    %true = arith.constant true
    %16 = arith.xori %12, %true : i1
    %17 = arith.extui %16 : i1 to i32
    %c0_i32_9 = arith.constant 0 : i32
    %18 = arith.cmpi ne, %17, %c0_i32_9 : i32
    scf.if %18 {
      %c0_16 = arith.constant 0 : index
      %c0_17 = arith.constant 0 : index
      %29 = vector.load %arg10[%c0_16, %c0_17] : memref<8x128xf32, #tpu.memory_space<vmem>>, vector<8x128xf32>
      %c0_18 = arith.constant 0 : index
      %c0_19 = arith.constant 0 : index
      %30 = vector.load %arg8[%c0_18, %c0_19] : memref<8x128xf32, #tpu.memory_space<vmem>>, vector<8x128xf32>
      %31 = arith.subf %30, %9 : vector<8x128xf32>
      %32 = math.absf %31 : vector<8x128xf32>
      %33 = arith.addf %29, %32 : vector<8x128xf32>
      %c0_20 = arith.constant 0 : index
      %c0_21 = arith.constant 0 : index
      %34 = vector.load %arg10[%c0_20, %c0_21] : memref<8x128xf32, #tpu.memory_space<vmem>>, vector<8x128xf32>
      tpu.vector_store %arg10[%c0_20, %c0_21], %33 {strides = array<i32>} : memref<8x128xf32, #tpu.memory_space<vmem>>, vector<8x128xf32>,
    } else {
    }
    %19 = arith.extui %12 : i1 to i32
    %c0_i32_10 = arith.constant 0 : i32
    %20 = arith.cmpi ne, %19, %c0_i32_10 : i32
    scf.if %20 {
      %c0_16 = arith.constant 0 : index
      %c0_17 = arith.constant 0 : index
      %29 = vector.load %arg9[%c0_16, %c0_17] : memref<8x128xf32, #tpu.memory_space<vmem>>, vector<8x128xf32>
      tpu.vector_store %arg9[%c0_16, %c0_17], %9 {strides = array<i32>} : memref<8x128xf32, #tpu.memory_space<vmem>>, vector<8x128xf32>,
    } else {
    }
    %c0_11 = arith.constant 0 : index
    %c0_12 = arith.constant 0 : index
    %21 = vector.load %arg8[%c0_11, %c0_12] : memref<8x128xf32, #tpu.memory_space<vmem>>, vector<8x128xf32>
    tpu.vector_store %arg8[%c0_11, %c0_12], %9 {strides = array<i32>} : memref<8x128xf32, #tpu.memory_space<vmem>>, vector<8x128xf32>,
    %22 = arith.extui %15 : i1 to i32
    %c0_i32_13 = arith.constant 0 : i32
    %23 = arith.cmpi ne, %22, %c0_i32_13 : i32
    scf.if %23 {
      %c0_16 = arith.constant 0 : index
      %c0_17 = arith.constant 0 : index
      %29 = vector.load %arg10[%c0_16, %c0_17] : memref<8x128xf32, #tpu.memory_space<vmem>>, vector<8x128xf32>
      %c0_18 = arith.constant 0 : index
      %c0_19 = arith.constant 0 : index
      %30 = vector.load %arg9[%c0_18, %c0_19] : memref<8x128xf32, #tpu.memory_space<vmem>>, vector<8x128xf32>
      %31 = arith.subf %9, %30 : vector<8x128xf32>
      %32 = math.absf %31 : vector<8x128xf32>
      %33 = arith.addf %29, %32 : vector<8x128xf32>
      %c0_20 = arith.constant 0 : index
      %c0_21 = arith.constant 0 : index
      %34 = vector.load %arg10[%c0_20, %c0_21] : memref<8x128xf32, #tpu.memory_space<vmem>>, vector<8x128xf32>
      tpu.vector_store %arg10[%c0_20, %c0_21], %33 {strides = array<i32>} : memref<8x128xf32, #tpu.memory_space<vmem>>, vector<8x128xf32>,
    } else {
    }
    %c0_i32_14 = arith.constant 0 : i32
    %24 = arith.cmpi eq, %arg0, %c0_i32_14 : i32
    %c7_i32 = arith.constant 7 : i32
    %25 = arith.cmpi eq, %arg1, %c7_i32 : i32
    %26 = arith.andi %24, %25 : i1
    %27 = arith.extui %26 : i1 to i32
    %c0_i32_15 = arith.constant 0 : i32
    %28 = arith.cmpi ne, %27, %c0_i32_15 : i32
    scf.if %28 {
      %c0_16 = arith.constant 0 : index
      %c0_17 = arith.constant 0 : index
      %29 = vector.load %arg10[%c0_16, %c0_17] : memref<8x128xf32, #tpu.memory_space<vmem>>, vector<8x128xf32>
      %30 = vector.shape_cast %29 : vector<8x128xf32> to vector<1x8x128xf32>
      %cst = arith.constant dense<0.000000e+00> : vector<1xf32>
      %31 = vector.multi_reduction <add>, %30, %cst [1, 2] : vector<1x8x128xf32> to vector<1xf32>
      %32 = vector.shape_cast %31 : vector<1xf32> to vector<1x1x1xf32>
      %33 = vector.extract %32[0, 0, 0] : f32 from vector<1x1x1xf32>
      %cst_18 = arith.constant 1.22070313E-4 : f32
      %34 = arith.mulf %33, %cst_18 : f32
      %c0_19 = arith.constant 0 : index
      %c0_20 = arith.constant 0 : index
      %35 = memref.load %arg7[%c0_19, %c0_20] : memref<1x1xf32, #tpu.memory_space<smem>>
      memref.store %34, %arg7[%c0_19, %c0_20] : memref<1x1xf32, #tpu.memory_space<smem>>
    } else {
    }
    return
  }
  func.func @transform_0(%arg0: i32, %arg1: i32, %arg2: memref<8xi32, #tpu.memory_space<smem>>, %arg3: memref<8xi32, #tpu.memory_space<smem>>, %arg4: memref<8xi32, #tpu.memory_space<smem>>) -> (i32, i32, i32) {
    %0 = arith.index_cast %arg1 : i32 to index
    %1 = memref.load %arg2[%0] : memref<8xi32, #tpu.memory_space<smem>>
    %c0_i32 = arith.constant 0 : i32
    %c0_i32_0 = arith.constant 0 : i32
    return %1, %arg0, %c0_i32 : i32, i32, i32
  }
  func.func @transform_1(%arg0: i32, %arg1: i32, %arg2: memref<8xi32, #tpu.memory_space<smem>>, %arg3: memref<8xi32, #tpu.memory_space<smem>>, %arg4: memref<8xi32, #tpu.memory_space<smem>>) -> (i32, i32, i32) {
    %0 = arith.index_cast %arg1 : i32 to index
    %1 = memref.load %arg2[%0] : memref<8xi32, #tpu.memory_space<smem>>
    %c0_i32 = arith.constant 0 : i32
    %c0_i32_0 = arith.constant 0 : i32
    return %1, %arg0, %c0_i32 : i32, i32, i32
  }
  func.func @transform_2(%arg0: i32, %arg1: i32, %arg2: memref<8xi32, #tpu.memory_space<smem>>, %arg3: memref<8xi32, #tpu.memory_space<smem>>, %arg4: memref<8xi32, #tpu.memory_space<smem>>) -> (i32, i32) {
    %c0_i32 = arith.constant 0 : i32
    %c0_i32_0 = arith.constant 0 : i32
    %c0_i32_1 = arith.constant 0 : i32
    return %c0_i32, %c0_i32_0 : i32, i32
  }
}

</mosaic_0001>

<bundles_post_ra>
// kernel: tpu_custom_call.1
= control target key start
LH: loop header
LB: loop body
LE: loop exit
PB: predicated region body
PF: predicated region fallthrough
CT: control target
= control target key end

     0   :  { %s681_s18 = smov [#allocation6]   ;;  %s957_s0 = inlined_call_operand.hbm [shape: s32[8], index: 0, kind: input, shape index: {}]   ;;  %s958_s3 = inlined_call_operand.hbm [shape: f32[8,8,128], index: 3, kind: input, shape index: {}]   ;;  %s959_s4 = inlined_call_operand.hbm [shape: f32[8,8,128], index: 4, kind: input, shape index: {}]   ;;  %s960_s5 = inlined_call_operand.hbm [shape: f32[1,1], index: 5, kind: output, shape index: {}]   ;;  %s961_s1 = inlined_call_operand.vmem [shape: s32[8], index: 1, kind: input, shape index: {}]   ;;  %s962_s2 = inlined_call_operand.vmem [shape: s32[8], index: 2, kind: input, shape index: {}]  }
   0x1   :  { %11 = dma.hbm_to_smem %s957_s0, 16, %s681_s18, [#allocation5] }
   0x2   :  { %s12_s23 = sshll.u32 %s961_s1, 4  ;;  %s16_s26 = sshll.u32 %s962_s2, 4  ;;  %s13_s23 = int_to_ptr.vmem [resolvable:$true] %s12_s23  ;;  %s17_s26 = int_to_ptr.vmem [resolvable:$true] %s16_s26 }
   0x3   :  { %s505_s27 = scalar_lea.vmem %s13_s23, 16  ;;  %p510_p1 = scmp.lt.s32.totalorder %s13_s23, %s13_s23 }
   0x4   :  { %p506_p0 = scmp.ne.s32.totalorder %s13_s23, %s505_s27  ;;  %p511_p2 = scmp.lt.s32.totalorder %s505_s27, %s505_s27 }
   0x6   :  { %p512_p3 = por %p511_p2, %p510_p1 }
   0x8   :  { %p513_p4 = pnand %p512_p3, %p506_p0 }
   0xa   :  { %516 = shalt.err (!%p513_p4)  }
   0xb   :  { %s682_s28 = smov [#allocation7]   ;;  %s517_s0 = scalar_lea.vmem %s17_s26, 16 }
   0xc   :  { %15 = dma.vmem_to_smem %s13_s23, 16, %s682_s28, [#allocation5] }
   0xd   :  { %p518_p5 = scmp.ne.s32.totalorder %s17_s26, %s517_s0  ;;  %p522_p6 = scmp.lt.s32.totalorder %s17_s26, %s17_s26 }
   0xe   :  { %p523_p7 = scmp.lt.s32.totalorder %s517_s0, %s517_s0 }
  0x10   :  { %p524_p8 = por %p523_p7, %p522_p6 }
  0x12   :  { %p525_p9 = pnand %p524_p8, %p518_p5 }
  0x14   :  { %528 = shalt.err (!%p525_p9)  }
  0x15   :  { %s683_s1 = smov [#allocation8]  }
  0x16   :  { %19 = dma.vmem_to_smem %s17_s26, 16, %s683_s1, [#allocation5] }
  0x17   :  { %631 = dma.done.wait [#allocation5], 48 }
  0x18   :  { %632 = vsyncadd [#allocation5], 4294967248 }
  0x19   :  { %21 = sfence }
  0x1a   :  { %22 = vsyncpa [#allocation10], 0 }
  0x1b   :  { %24 = vsyncpa [#allocation10 + $0x1], 0 }
  0x1c   :  { %25 = vsyncpa [#allocation13], 0 }
  0x1d   :  { %27 = vsyncpa [#allocation13 + $0x1], 0 }
  0x1e   :  { %28 = vsyncpa [#allocation11], 0  ;;  %s727_s2 = smov 0   ;;  %s729_s29 = smov 0  }
  0x1f   :  { %s731_s30 = smov 0   ;;  %s733_s6 = smov 0  }
  0x20   :  { %s735_s7 = smov 0   ;;  %s737_s8 = smov 0  }
  0x21   :  { %s739_s9 = smov 0   ;;  %s741_s10 = smov 0  }
  0x22   :  { %s743_s11 = smov 0  }
  0x23 LB: > { %971 = sst [smem:[#allocation23_spill]] %s667_s8  ;;  %s43_s12 = sadd.s32 1, %s675_s10  ;;  %s679_s11 = sphi %s743_s11, %s34_s11   ;;  %s675_s10 = sphi %s741_s10, %s1001_s10   ;;  %s671_s9 = sphi %s739_s9, %s1000_s9   ;;  %s667_s8 = sphi %s737_s8, %s993_s8   ;;  %s663_s7 = sphi %s735_s7, %s999_s7   ;;  %s659_s6 = sphi %s733_s6, %s998_s6   ;;  %s655_s30 = sphi %s731_s30, %s997_s30   ;;  %s651_s29 = sphi %s729_s29, %s996_s29   ;;  %s647_s2 = sphi %s727_s2, %s995_s2  }
  0x24   : > { %s963_s13 = sadd.s32 4294967295, %s679_s11   ;;  %p44_p10 = scmp.ge.s32.totalorder %s43_s12, 8 }
  0x25   : > { %s50_s14 = sld [smem:[#allocation6 + %s675_s10]]  ;;  %p64_p11 = scmp.ne.s32.totalorder %s667_s8, %s663_s7 }
  0x26   : > { %s1003_s12 = smov (%p44_p10, %s43_s12), 0  ;;  %p967_p12 = scmp.eq.s32.totalorder %s679_s11, 0 }
  0x27   : > { %972 = sst [smem:[#allocation24_spill]] %s1003_s12  ;;  %p70_p13 = scmp.ne.s32.totalorder %s663_s7, %s659_s6 }
  0x28   : > { %s51_s15 = sld [smem:[#allocation6 + %s1003_s12]]  ;;  %p782_p0 = scmp.eq.s32.totalorder %s963_s13, 0 }
  0x29   : > { %s57_s17 = sadd.s32 1, %s667_s8  ;;  %p789_p1 = por %p967_p12, %p64_p11 }
  0x2a   : > { %s973_s16 = scalar_select %p782_p0, 1, 0 }
  0x2b   : > { %p795_p2 = por %p782_p0, %p70_p13  ;;  %s800_s20 = sld [smem:[#allocation6 + %s675_s10]] }
  0x2c   : > { %s145_s21 = sand.u32 1, %s667_s8   ;;  %p966_p3 = scmp.lt.s32.totalorder %s679_s11, 8 }
  0x2d   : > { %s975_s19 = scalar_select %p795_p2, 1, 0 }
  0x2e   : > { %s374_s22 = sshll.u32 %s145_s21, 3  ;;  %s52_s23 = ssub.s32 %s50_s14, %s51_s15 }
  0x2f   : > { %p808_p4 = pnand %p966_p3, %p789_p1  ;;  %p55_p5 = scmp.eq.s32.totalorder %s52_s23, 0 }
  0x30   : > { %s149_s25 = scalar_lea.vmem [#allocation9], %s374_s22  ;;  %p378_p6 = scmp.ge.s32.totalorder %s679_s11, 1 }
  0x31   : > { %s158_s26 = sshll.u32 %s149_s25, 4  ;;  %p183_p7 = scmp.lt.s32.totalorder %s679_s11, 9  ;;  %s833_s26 = int_to_ptr.vmem [resolvable:$true] %s158_s26 }
  0x32   : > { %s394_s27 = scalar_select %p789_p1, [#allocation6], [#allocation15] }
  0x33   : > { %s815_s28 = scalar_select %p55_p5, %s667_s8, %s57_s17  }
  0x34   : > { %s395_s0 = scalar_select %p789_p1, %s675_s10, 0 }
  0x35   : > { %977 = sst [smem:[#allocation25_spill]] %s815_s28  ;;  %s1005_s27 = smov (!%p966_p3, %s394_s27), [#allocation17] }
  0x36   : > { %s1007_s0 = smov (!%p966_p3, %s395_s0), 0  ;;  %p826_p8 = pnand %p378_p6, %p183_p7 }
  0x37   : > { %s150_s1 = sld [smem:[%s1005_s27 + %s1007_s0]]  ;;  %s87_s23 = sadd.s32 1, %s655_s30 }
  0x38   : > { %s978_s6 = scalar_select %p826_p8, 1, 0 }
  0x39   : > { %s831_s14 = sld [smem:[#allocation6 + %s1003_s12]]  ;;  %s146_s25 = scalar_lea.sflag [#allocation10], %s145_s21 }
  0x3a   : > { %p531_p13 = pneg %p808_p4  ;;  %s534_s12 = scalar_lea.hbm %s958_s3, 1024 }
  0x3d   : > { %s375_s15 = sshll.u32 %s150_s1, 7 }
  0x3e   : > { %s156_s22 = scalar_lea.hbm %s958_s3, %s375_s15 }
  0x3f   : > { %s529_s13 = scalar_lea.hbm %s156_s22, 128  ;;  %p535_p6 = scmp.lt.s32.totalorder %s156_s22, %s958_s3 }
  0x40   : > { %p530_p11 = scmp.ne.s32.totalorder %s156_s22, %s529_s13  ;;  %p536_p7 = scmp.lt.s32.totalorder %s534_s12, %s529_s13 }
  0x42   : > { %p532_p1 = pnand %p531_p13, %p530_p11  ;;  %p537_p3 = por %p536_p7, %p535_p6 }
  0x44   : > { %p533_p5 = pneg %p532_p1 }
  0x46   : > { %p538_p9 = pnand %p537_p3, %p533_p5 }
  0x48   : > { %541 = shalt.err (!%p538_p9)
}
  0x49   : > { %s542_s21 = scalar_lea.vmem %s833_s26, 128  ;;  %s684_s1 = smov [#allocation9]  }
  0x4a   : > { %p543_p12 = scmp.ne.s32.totalorder %s833_s26, %s542_s21  ;;  %s547_s15 = sshll.u32 %s684_s1, 4  ;;  %s548_s15 = int_to_ptr.vmem [resolvable:$false] %s547_s15 }
  0x4b   : > { %s549_s17 = scalar_lea.vmem %s548_s15, 256  ;;  %p550_p1 = scmp.lt.s32.totalorder %s833_s26, %s548_s15 }
  0x4c   : > { %p545_p10 = pnand %p543_p12, %p531_p13  ;;  %p551_p2 = scmp.lt.s32.totalorder %s549_s17, %s542_s21 }
  0x4e   : > { %p546_p11 = pneg %p545_p10  ;;  %p552_p8 = por %p551_p2, %p550_p1 }
  0x50   : > { %p553_p0 = pnand %p552_p8, %p546_p11 }
  0x52   : > { %556 = shalt.err (!%p553_p0)
}
  0x53   : > { %411 = dma.hbm_to_vmem [thread:$0]  (!%p808_p4), %s156_s22, 128, %s833_s26, %s146_s25  }
  0x54   : > { %p979_p12 = scmp.ne.s32.totalorder %s973_s16, 0  ;;  %p980_p0 = scmp.ne.s32.totalorder %s651_s29, %s647_s2 }
  0x55   : > { %s165_s12 = sand.u32 1, %s655_s30   ;;  %s82_s13 = ssub.s32 %s800_s20, %s831_s14 }
  0x56   : > { %p862_p2 = por %p980_p0, %p979_p12  ;;  %p982_p3 = scmp.eq.s32.totalorder %s679_s11, 0 }
  0x57   : > { %p983_p8 = scmp.ne.s32.totalorder %s655_s30, %s651_s29  ;;  %p85_p10 = scmp.eq.s32.totalorder %s82_s13, 0 }
  0x58   : > { %s981_s8 = scalar_select %p862_p2, 1, 0 }
  0x59   : > { %p96_p9 = por %p983_p8, %p982_p3  ;;  %s376_s24 = sshll.u32 %s165_s12, 3 }
  0x5a   : > { %p984_p13 = scmp.lt.s32.totalorder %s679_s11, 8  ;;  %s169_s14 = scalar_lea.vmem [#allocation12], %s376_s24 }
  0x5b   : > { %s883_s16 = scalar_select %p85_p10, %s655_s30, %s87_s23  }
  0x5c   : > { %p876_p5 = pnand %p984_p13, %p96_p9  ;;  %p986_p4 = pmov %p984_p13 }
  0x5d   : > { %s397_s2 = scalar_select %p96_p9, [#allocation6], [#allocation16] }
  0x5e   : > { %s398_s26 = scalar_select %p96_p9, %s675_s10, 0 }
  0x5f   : > { %s1009_s2 = smov (!%p986_p4, %s397_s2), [#allocation18]  ;;  %p987_p6 = pmov %p986_p4 }
  0x60   : > { %s178_s18 = sshll.u32 %s169_s14, 4  ;;  %s166_s21 = scalar_lea.sflag [#allocation13], %s165_s12  ;;  %s890_s18 = int_to_ptr.vmem [resolvable:$true] %s178_s18 }
  0x61   : > { %s1011_s26 = smov (!%p987_p6, %s398_s26), 0  ;;  %p559_p11 = pneg %p876_p5 }
  0x62   : > { %s170_s20 = sld [smem:[%s1009_s2 + %s1011_s26]]  ;;  %s562_s17 = scalar_lea.hbm %s959_s4, 1024 }
  0x68   : > { %s377_s22 = sshll.u32 %s170_s20, 7 }
  0x69   : > { %s176_s0 = scalar_lea.hbm %s959_s4, %s377_s22 }
  0x6a   : > { %s557_s1 = scalar_lea.hbm %s176_s0, 128  ;;  %p563_p0 = scmp.lt.s32.totalorder %s176_s0, %s959_s4 }
  0x6b   : > { %p558_p7 = scmp.ne.s32.totalorder %s176_s0, %s557_s1  ;;  %p564_p3 = scmp.lt.s32.totalorder %s562_s17, %s557_s1 }
  0x6d   : > { %p560_p1 = pnand %p559_p11, %p558_p7  ;;  %p565_p8 = por %p564_p3, %p563_p0 }
  0x6f   : > { %p561_p12 = pneg %p560_p1 }
  0x71   : > { %p566_p9 = pnand %p565_p8, %p561_p12 }
  0x73   : > { %569 = shalt.err (!%p566_p9)
}
  0x74   : > { %s570_s12 = scalar_lea.vmem %s890_s18, 128  ;;  %s685_s2 = smov [#allocation12]  }
  0x75   : > { %p571_p10 = scmp.ne.s32.totalorder %s890_s18, %s570_s12  ;;  %s575_s26 = sshll.u32 %s685_s2, 4  ;;  %s576_s26 = int_to_ptr.vmem [resolvable:$false] %s575_s26 }
  0x76   : > { %s577_s20 = scalar_lea.vmem %s576_s26, 256  ;;  %p578_p6 = scmp.lt.s32.totalorder %s890_s18, %s576_s26 }
  0x77   : > { %p573_p13 = pnand %p571_p10, %p559_p11  ;;  %p579_p7 = scmp.lt.s32.totalorder %s577_s20, %s570_s12 }
  0x79   : > { %p574_p4 = pneg %p573_p13  ;;  %p580_p1 = por %p579_p7, %p578_p6 }
  0x7b   : > { %p581_p2 = pnand %p580_p1, %p574_p4 }
  0x7d   : > { %584 = shalt.err (!%p581_p2)
}
  0x7e   : > { %416 = dma.hbm_to_vmem [thread:$0]  (!%p876_p5), %s176_s0, 128, %s890_s18, %s166_s21  }
  0x7f   : > { %p988_p12 = scmp.ne.s32.totalorder %s978_s6, 0 }
  0x80   : > { %s189_s14 = sand.u32 (!%p988_p12), 1, %s663_s7   ;;  %p989_p11 = scmp.ne.s32.totalorder (!%p988_p12), %s975_s19, 0 }
  0x81   : > { %187 = sbr.rel (%p988_p12) target bundleno = 407 (0x197), region = 28  ;;  %s379_s22 = sshll.u32 (!%p988_p12), %s189_s14, 3 }
  0x82   : > { %s190_s25 = scalar_lea.sflag (!%p988_p12), [#allocation10], %s189_s14  ;;  %s193_s27 = scalar_lea.vmem (!%p988_p12), [#allocation9], %s379_s22 }
  0x86   : > { %634 = dma.done.wait (%p989_p11), %s190_s25, 128  }
  0x87   : > { %636 = vsyncadd (%p989_p11), %s190_s25, 4294967168  ;;  %s198_s1 = sand.u32 1, %s651_s29   ;;  %p990_p2 = scmp.ne.s32.totalorder %s981_s8, 0 }
  0x88   : > { %s380_s28 = sshll.u32 %s198_s1, 3  ;;  %s199_s23 = scalar_lea.sflag [#allocation13], %s198_s1 }
  0x89   : > { %s202_s18 = scalar_lea.vmem [#allocation12], %s380_s28 }
  0x8a   : > { %638 = dma.done.wait (%p990_p2), %s199_s23, 128  }
  0x8b   : > { %640 = vsyncadd (%p990_p2), %s199_s23, 4294967168  ;;  %p226_p5 = scmp.eq.s32.totalorder %s671_s9, 0 }
  0x8c   : > { %v686_v0 = vmov (%p226_p5), 0.0  }
  0x8d   : > { %230 = sbr.rel (!%p226_p5) target bundleno = 146 (0x92), region = 40  ;;  %231 = vst [vmem:[#allocation4] sm:$0xff] (%p226_p5), %v686_v0 }
  0x92 PF: > { %v232_v1 = vld [vmem:[%s193_s27] sm:$0xff]  ;;  %v233_v2 = vld [vmem:[%s202_s18] sm:$0xff]  ;;  %s235_s19 = sld [smem:[#allocation7 + %s671_s9]] }
  0x93   : > { %v234_v3 = vsub.f32 %v232_v1, %v233_v2  ;;  %s237_s6 = sld [smem:[#allocation8 + %s671_s9]] }
  0x98   : > { %p382_p0 = scmp.ne.s32.totalorder %s235_s19, 0 }
  0x9a   : > { %242 = sbr.rel (%p382_p0) target bundleno = 167 (0xa7), region = 44 }
  0x9f   : > { %v244_v4 = vld [vmem:[#allocation2] sm:$0xff]  ;;  %v243_v6 = vld [vmem:[#allocation4] sm:$0xff] }
  0xa0   : > { %v245_v5 = vsub.f32 %v244_v4, %v234_v3 }
  0xa2   : > { %v246_v7 = vand.u32 2147483647, %v245_v5 }
  0xa4   : > { %v247_v8 = vadd.f32 %v246_v7, %v243_v6 }
  0xa6   : > { %248 = vst [vmem:[#allocation4] sm:$0xff] %v247_v8 }
  0xa7 PF: > { %p383_p3 = scmp.eq.s32.totalorder %s235_s19, 0 }
  0xa9   : > { %251 = sbr.rel (%p383_p3) target bundleno = 175 (0xaf), region = 48 }
  0xae   : > { %252 = vst [vmem:[#allocation3] sm:$0xff] %v234_v3 }
  0xaf PF: > { %253 = vst [vmem:[#allocation2] sm:$0xff] %v234_v3  ;;  %p384_p8 = scmp.eq.s32.totalorder %s237_s6, 0 }
  0xb1   : > { %256 = sbr.rel (%p384_p8) target bundleno = 190 (0xbe), region = 52 }
  0xb6   : > { %v258_v9 = vld [vmem:[#allocation3] sm:$0xff]  ;;  %v257_v11 = vld [vmem:[#allocation4] sm:$0xff] }
  0xb7   : > { %v259_v10 = vsub.f32 %v234_v3, %v258_v9 }
  0xb9   : > { %v260_v12 = vand.u32 2147483647, %v259_v10 }
  0xbb   : > { %v261_v13 = vadd.f32 %v260_v12, %v257_v11 }
  0xbd   : > { %262 = vst [vmem:[#allocation4] sm:$0xff] %v261_v13 }
  0xbe PF: > { %p263_p9 = scmp.eq.s32.totalorder %s671_s9, 7 }
  0xc0   : > { %267 = sbr.rel (!%p263_p9) target bundleno = 400 (0x190), region = 56 }
  0xc4   : > { %v268_v14 = vld [vmem:[#allocation4] sm:$0xff] (%p263_p9) }
  0xc5   : > { %269 = vadd.xlane.f32.xlu0 %v268_v14 }
 0x14e   : > { %v270_v15 = vpop.xlane.xlu0 %269 }
 0x14f   : > { %v271_v16 = vrot.slane %v270_v15, 4 }
 0x151   : > { %v272_v17 = vadd.f32 %v271_v16, %v270_v15 }
 0x153   : > { %v273_v18 = vrot.slane %v272_v17, 2 }
 0x155   : > { %v274_v19 = vadd.f32 %v273_v18, %v272_v17 }
 0x157   : > { %v275_v20 = vrot.slane %v274_v19, 1 }
 0x159   : > { %v276_v21 = vadd.f32 %v275_v20, %v274_v19 }
 0x15b   : > { %392 = vpush %v276_v21 }
 0x18c   : > { %s393_s8 = spop %392 }
 0x18d   : > { %s278_s0 = smul.f32 0.00012207031, %s393_s8 }
 0x18f   : > { %280 = sst [smem:[#allocation14]] %s278_s0 }
 0x190 PF: > { %s991_s21 = sadd.s32 4294967295, %s679_s11   ;;  %s687_s15 = smov [#allocation14]  }
 0x191   : > { %p418_p10 = scmp.eq.s32.totalorder %s991_s21, 7 }
 0x193   : > { %403 = dma.smem_to_hbm (%p418_p10), %s687_s15, 16, %s960_s5, [#allocation11]  }
 0x194   : > { %642 = dma.done.wait (%p418_p10), [#allocation11], 16  }
 0x195   : > { %644 = vsyncadd (%p418_p10), [#allocation11], 4294967280 }
 0x196   : > { %294 = sfence }
 0x197 PF: > { %s34_s11 = sadd.s32 1, %s679_s11   ;;  %s992_s13 = sld [smem:[#allocation23_spill]] }
 0x198   : > { %p31_p13 = scmp.ge.s32.totalorder %s34_s11, 10   ;;  %s993_s8 = sld [smem:[#allocation25_spill]] }
 0x199   : > { %s994_s24 = sld [smem:[#allocation24_spill]]  ;;  %s995_s2 = smov %s651_s29 }
 0x19a   : > { %s996_s29 = smov %s655_s30  ;;  %s997_s30 = smov %s883_s16 }
 0x19b   : > { %s998_s6 = smov %s663_s7  ;;  %s1000_s9 = smov %s675_s10 }
 0x19c   :  { %33 = sbr.rel (!%p31_p13) target bundleno = 35 (0x23), region = 99 }
 0x19d   : > { %s999_s7 = smov %s992_s13 }
 0x19f   : > { %s1001_s10 = smov %s994_s24 }
 0x1a1   :  { %300 = vsyncpa [#allocation10], 1 }
 0x1a2   :  { %302 = vsyncpa [#allocation10 + $0x1], 1 }
 0x1a3   :  { %303 = vsyncpa [#allocation13], 1 }
 0x1a4   :  { %305 = vsyncpa [#allocation13 + $0x1], 1 }
 0x1a5   :  { %306 = vsyncpa [#allocation11], 1 }
 0x1a6   :  { %308 = vsyncpa [#allocation11 + $0x1], 1 }

</bundles_post_ra>
